<compile_context>
chip_gen: v5e
topology: v5e:2x2
jax: 0.10.0
libtpu: 0.0.40
codegen_flags: <defaults>
</compile_context>

<pallas_src>
import functools

import jax
import jax.numpy as jnp
from jax.experimental import pallas as pl
from jax.experimental.pallas import tpu as pltpu

# Per-block byte budgets for the streamed array (single buffer).  The apply
# kernel double-buffers an input AND an output block (~4x block bytes live in
# VMEM); the stats kernel only double-buffers its input (~2x), so it gets a
# larger cap.  Both stay well under the explicit scoped-VMEM limit below on
# every generation (v5e/v6e: 128 MiB physical, v7x: 64 MiB physical).
_APPLY_BLOCK_BYTES = 4 * 1024 * 1024
_STATS_BLOCK_BYTES = 6 * 1024 * 1024
_VMEM_LIMIT_BYTES = 40 * 1024 * 1024   # > v5e's 16 MiB default, < v7x's 64 MiB phys


def _choose_blocks(R, M, max_bytes, *, itemsize=4, ensure_multistep=False):
    """Pick a (tr, tm) block for a streamed (R, M) array.

    Lane-tiles (tm multiple of 128) when M % 128 == 0, otherwise row-tiles
    (tr multiple of 8, tm = M) so stores stay lane-dense over full rows and a
    single block never maps the whole array (VMEM OOM hazard for odd spatial
    sizes with large N*C).
    """
    if M % 128 == 0:
        # Row tile: full R unless R alone busts the budget at 128 lanes.
        tr = R
        if R % 8 == 0 and R * 128 * itemsize > max_bytes:
            tr = max(8, (max_bytes // (128 * itemsize)) // 8 * 8)
            while R % tr != 0:
                tr -= 8
        # Lane tile: largest multiple of 128 dividing M under the byte cap.
        cap = max(128, (max_bytes // (tr * itemsize)) // 128 * 128)
        tm = min(cap, M)
        if ensure_multistep and M >= 256:
            # Guarantee >=2 grid steps so v7x's two TensorCores both get work.
            tm = min(tm, (M // 2) // 128 * 128)
        tm = max(tm, 128)
        while M % tm != 0:
            tm -= 128
    else:
        # Odd spatial size: keep each row whole (lane-dense stores on full M),
        # bound VMEM by tiling rows.
        tm = M
        tr = R
        if R % 8 == 0:
            cap = max(8, (max_bytes // (M * itemsize)) // 8 * 8)
            tr = min(cap, R)
            while R % tr != 0:
                tr -= 8
        # TODO(synk): R % 8 != 0 together with M % 128 != 0 still falls back to
        # a single whole-array block; pad rows to a multiple of 8 if that OOMs.
    return tr, tm


# ---------------------------------------------------------------------------
# Fused stats kernel (data-dependent init): one pass over z producing, per
# row, shift (= first element), sum(x - shift) and sum((x - shift)^2) with
# resident (tr, 1) f32 accumulators (P3 init/accumulate pattern).
# ---------------------------------------------------------------------------
def _stats_kernel(z_ref, s1_ref, s2_ref, shift_ref):
    x = z_ref[...].astype(jnp.float32)

    @pl.when(pl.program_id(1) == 0)
    def _():
        shift_ref[...] = x[:, 0:1]          # per-row shift, resident across j
        s1_ref[...] = jnp.zeros_like(s1_ref)
        s2_ref[...] = jnp.zeros_like(s2_ref)

    d = x - shift_ref[...]
    s1_ref[...] += jnp.sum(d, axis=1, keepdims=True)
    s2_ref[...] += jnp.sum(d * d, axis=1, keepdims=True)


def actnorm_init(z2d, N, C):
    """Per-channel data-dependent init: loc_c = -mean, scale_c = 1/(std+1e-6)."""
    R, M = z2d.shape
    total = N * M
    tr, tm = _choose_blocks(R, M, _STATS_BLOCK_BYTES,
                            itemsize=z2d.dtype.itemsize)
    out_sd = jax.ShapeDtypeStruct((R, 1), jnp.float32)
    row_spec = pl.BlockSpec((tr, 1), lambda i, j: (i, 0))
    s1, s2, shift = pl.pallas_call(
        _stats_kernel,
        out_shape=(out_sd, out_sd, out_sd),
        grid=(R // tr, M // tm),
        in_specs=[pl.BlockSpec((tr, tm), lambda i, j: (i, j))],
        out_specs=(row_spec, row_spec, row_spec),
        compiler_params=pltpu.CompilerParams(
            dimension_semantics=("parallel", "arbitrary"),
            vmem_limit_bytes=_VMEM_LIMIT_BYTES),
        cost_estimate=pl.CostEstimate(
            flops=3 * R * M, transcendentals=0,
            bytes_accessed=R * M * z2d.dtype.itemsize + 3 * R * 4),
    )(z2d)

    # Tiny O(N*C) exact combine in jnp (hoisted out of the kernel).
    s1 = s1.reshape(N, C)
    s2 = s2.reshape(N, C)
    shift = shift.reshape(N, C)
    mean_c = jnp.sum(shift * M + s1, axis=0) / total                  # (C,)
    d0 = shift - mean_c[None, :]
    # Sum over channel of (x - mean_c)^2, exactly, from the shifted moments.
    css_c = jnp.sum(s2 + 2.0 * d0 * s1 + M * (d0 * d0), axis=0)       # (C,)
    # TODO(synk): total == 1 divides by zero here (torch.std also returns NaN).
    var_c = jnp.maximum(css_c / (total - 1), 0.0)
    std_c = jnp.sqrt(var_c)
    loc_c = -mean_c
    scale_c = 1.0 / (std_c + 1e-6)
    return loc_c, scale_c


# ---------------------------------------------------------------------------
# Apply kernel: pure elementwise per-row affine transform (HBM-bound).
# ---------------------------------------------------------------------------
def _apply_kernel(z_ref, s_ref, b_ref, out_ref, *, reverse):
    z = z_ref[...]
    s = s_ref[...]          # (tr, 1): scale (forward) / 1/scale (reverse)
    b = b_ref[...]          # (tr, 1): loc
    if not reverse:
        out_ref[...] = (s * (z + b)).astype(out_ref.dtype)
    else:
        out_ref[...] = (z * s - b).astype(out_ref.dtype)


def actnorm_apply(z2d, s_rows, b_rows, reverse=False, donate_input=False):
    R, M = z2d.shape
    nbytes = z2d.dtype.itemsize
    tr, tm = _choose_blocks(R, M, _APPLY_BLOCK_BYTES,
                            itemsize=nbytes, ensure_multistep=True)
    kernel = functools.partial(_apply_kernel, reverse=reverse)
    return pl.pallas_call(
        kernel,
        out_shape=jax.ShapeDtypeStruct((R, M), z2d.dtype),
        grid=(R // tr, M // tm),
        in_specs=[
            pl.BlockSpec((tr, tm), lambda i, j: (i, j)),
            pl.BlockSpec((tr, 1), lambda i, j: (i, 0)),
            pl.BlockSpec((tr, 1), lambda i, j: (i, 0)),
        ],
        out_specs=pl.BlockSpec((tr, tm), lambda i, j: (i, j)),
        compiler_params=pltpu.CompilerParams(
            dimension_semantics=("parallel", "parallel"),   # no resident state
            vmem_limit_bytes=_VMEM_LIMIT_BYTES),
        cost_estimate=pl.CostEstimate(
            flops=2 * R * M, transcendentals=0,
            bytes_accessed=2 * R * M * nbytes + 2 * R * 4),
        # Optional in-place update (same shape/dtype); off by default so the
        # caller may keep using z afterwards.
        input_output_aliases=({0: 0} if donate_input else {}),
    )(z2d, s_rows, b_rows)


# ---------------------------------------------------------------------------
# Python wrapper mirroring ActnormLayer.forward
# ---------------------------------------------------------------------------
def actnorm_forward(z, ldj, loc, scale, initialized, reverse=False):
    """z: (N, C, H, W), ldj: (N,), loc/scale: (1, C, 1, 1).

    `initialized` / `reverse` are static Python flags (registered buffer /
    kwarg in the module).  Returns (out, ldj_out, loc_used, scale_used)."""
    N, C, H, W = z.shape
    R, M = N * C, H * W
    z2d = z.reshape(R, M)                     # contiguous view, no transpose

    if (not reverse) and (not initialized):
        loc_c, scale_c = actnorm_init(z2d, N, C)          # data-dependent init
    else:
        loc_c = loc.reshape(C).astype(jnp.float32)
        scale_c = scale.reshape(C).astype(jnp.float32)

    # broadcast per-channel params to per-row (row = n*C + c) vectors (tiny)
    loc_rows = jnp.tile(loc_c, N).reshape(R, 1)
    scale_rows = jnp.tile(scale_c, N).reshape(R, 1)
    s_rows = (1.0 / scale_rows) if reverse else scale_rows   # reciprocal hoisted

    out2d = actnorm_apply(z2d, s_rows, loc_rows, reverse=reverse)
    out = out2d.reshape(N, C, H, W)

    # log-det term: O(C) work, hoisted out of the per-tile kernel
    delta = jnp.float32(H * W) * jnp.sum(jnp.log(jnp.abs(scale_c)))
    ldj_out = ldj - delta if reverse else ldj + delta

    return out, ldj_out, loc_c.reshape(1, C, 1, 1), scale_c.reshape(1, C, 1, 1)


# ---------------------------------------------------------------------------
if __name__ == "__main__":
    key = jax.random.PRNGKey(0)
    N, C, H, W = 2, 4, 16, 16
    z = jax.random.normal(key, (N, C, H, W), dtype=jnp.float32) * 1.7 + 0.3
    ldj = jnp.zeros((N,), dtype=jnp.float32)

    # parameters as created in __init__ (buffer `initialized` starts at 0)
    loc = jnp.zeros((1, C, 1, 1), dtype=jnp.float32)
    scale = jnp.ones((1, C, 1, 1), dtype=jnp.float32)

    # --- forward pass (triggers data-dependent init, like PyTorch) ---
    out, ldj_out, loc_used, scale_used = actnorm_forward(
        z, ldj, loc, scale, initialized=False, reverse=False)
    jax.block_until_ready((out, ldj_out, loc_used, scale_used))

    # --- pure-JAX reference check (silent) ---
    flat = jnp.transpose(z, (1, 0, 2, 3)).reshape(C, -1)
    mean_ref = jnp.mean(flat, axis=1).reshape(1, C, 1, 1)
    std_ref = jnp.std(flat, axis=1, ddof=1).reshape(1, C, 1, 1)
    loc_ref = -mean_ref
    scale_ref = 1.0 / (std_ref + 1e-6)
    out_ref = scale_ref * (z + loc_ref)
    ldj_ref = ldj + H * W * jnp.sum(jnp.log(jnp.abs(scale_ref)))
    assert jnp.allclose(loc_used, loc_ref, atol=1e-5, rtol=1e-5)
    assert jnp.allclose(scale_used, scale_ref, atol=1e-4, rtol=1e-4)
    assert jnp.allclose(out, out_ref, atol=1e-4, rtol=1e-4)
    assert jnp.allclose(ldj_out, ldj_ref, atol=1e-3, rtol=1e-4)

    # --- reverse pass (uses the now-initialized params) ---
    z_rec, ldj_rec, _, _ = actnorm_forward(
        out, ldj_out, loc_used, scale_used, initialized=True, reverse=True)
    jax.block_until_ready((z_rec, ldj_rec))
    assert jnp.allclose(z_rec, z, atol=1e-4, rtol=1e-4)
    assert jnp.allclose(ldj_rec, ldj, atol=1e-3)

    print("KERNEL_OK")
</pallas_src>

<mosaic_0001>
module attributes {stable_mosaic.version = 11 : i64} {
  func.func @_stats_kernel(%arg0: i32, %arg1: i32, %arg2: memref<8x256xf32, #tpu.memory_space<vmem>>, %arg3: memref<8x1xf32, #tpu.memory_space<vmem>>, %arg4: memref<8x1xf32, #tpu.memory_space<vmem>>, %arg5: memref<8x1xf32, #tpu.memory_space<vmem>>) attributes {dimension_semantics = [#tpu.dimension_semantics<parallel>, #tpu.dimension_semantics<arbitrary>], iteration_bounds = array<i64: 1, 1>, scalar_prefetch = 0 : i64, scratch_operands = 0 : i64, tpu.core_type = #tpu.core_type<tc>, window_params = [{transform_indices = @transform_0, window_bounds = array<i64: 8, 256>}, {transform_indices = @transform_1, window_bounds = array<i64: 8, 1>}, {transform_indices = @transform_2, window_bounds = array<i64: 8, 1>}, {transform_indices = @transform_3, window_bounds = array<i64: 8, 1>}]} {
    %c0 = arith.constant 0 : index
    %c0_0 = arith.constant 0 : index
    %0 = vector.load %arg2[%c0, %c0_0] : memref<8x256xf32, #tpu.memory_space<vmem>>, vector<8x256xf32>
    %c0_i32 = arith.constant 0 : i32
    %1 = arith.cmpi eq, %arg1, %c0_i32 : i32
    %2 = arith.extui %1 : i1 to i32
    %c0_i32_1 = arith.constant 0 : i32
    %3 = arith.cmpi ne, %2, %c0_i32_1 : i32
    scf.if %3 {
      %18 = vector.extract_strided_slice %0 {offsets = [0, 0], sizes = [8, 1], strides = [1, 1]} : vector<8x256xf32> to vector<8x1xf32>
      %c0_13 = arith.constant 0 : index
      %c0_14 = arith.constant 0 : index
      %19 = vector.load %arg5[%c0_13, %c0_14] : memref<8x1xf32, #tpu.memory_space<vmem>>, vector<8x1xf32>
      tpu.vector_store %arg5[%c0_13, %c0_14], %18 {strides = array<i32>} : memref<8x1xf32, #tpu.memory_space<vmem>>, vector<8x1xf32>,
      %cst_15 = arith.constant 0.000000e+00 : f32
      %20 = vector.broadcast %cst_15 : f32 to vector<8x1xf32>
      %c0_16 = arith.constant 0 : index
      %c0_17 = arith.constant 0 : index
      %21 = vector.load %arg3[%c0_16, %c0_17] : memref<8x1xf32, #tpu.memory_space<vmem>>, vector<8x1xf32>
      tpu.vector_store %arg3[%c0_16, %c0_17], %20 {strides = array<i32>} : memref<8x1xf32, #tpu.memory_space<vmem>>, vector<8x1xf32>,
      %cst_18 = arith.constant 0.000000e+00 : f32
      %22 = vector.broadcast %cst_18 : f32 to vector<8x1xf32>
      %c0_19 = arith.constant 0 : index
      %c0_20 = arith.constant 0 : index
      %23 = vector.load %arg4[%c0_19, %c0_20] : memref<8x1xf32, #tpu.memory_space<vmem>>, vector<8x1xf32>
      tpu.vector_store %arg4[%c0_19, %c0_20], %22 {strides = array<i32>} : memref<8x1xf32, #tpu.memory_space<vmem>>, vector<8x1xf32>,
    } else {
    }
    %c0_2 = arith.constant 0 : index
    %c0_3 = arith.constant 0 : index
    %4 = vector.load %arg5[%c0_2, %c0_3] : memref<8x1xf32, #tpu.memory_space<vmem>>, vector<8x1xf32>
    %5 = vector.broadcast %4 : vector<8x1xf32> to vector<8x256xf32>
    %6 = arith.subf %0, %5 : vector<8x256xf32>
    %c0_4 = arith.constant 0 : index
    %c0_5 = arith.constant 0 : index
    %7 = vector.load %arg3[%c0_4, %c0_5] : memref<8x1xf32, #tpu.memory_space<vmem>>, vector<8x1xf32>
    %cst = arith.constant dense<0.000000e+00> : vector<8xf32>
    %8 = vector.multi_reduction <add>, %6, %cst [1] : vector<8x256xf32> to vector<8xf32>
    %9 = vector.shape_cast %8 : vector<8xf32> to vector<8x1xf32>
    %10 = arith.addf %7, %9 : vector<8x1xf32>
    %c0_6 = arith.constant 0 : index
    %c0_7 = arith.constant 0 : index
    %11 = vector.load %arg3[%c0_6, %c0_7] : memref<8x1xf32, #tpu.memory_space<vmem>>, vector<8x1xf32>
    tpu.vector_store %arg3[%c0_6, %c0_7], %10 {strides = array<i32>} : memref<8x1xf32, #tpu.memory_space<vmem>>, vector<8x1xf32>,
    %c0_8 = arith.constant 0 : index
    %c0_9 = arith.constant 0 : index
    %12 = vector.load %arg4[%c0_8, %c0_9] : memref<8x1xf32, #tpu.memory_space<vmem>>, vector<8x1xf32>
    %13 = arith.mulf %6, %6 : vector<8x256xf32>
    %cst_10 = arith.constant dense<0.000000e+00> : vector<8xf32>
    %14 = vector.multi_reduction <add>, %13, %cst_10 [1] : vector<8x256xf32> to vector<8xf32>
    %15 = vector.shape_cast %14 : vector<8xf32> to vector<8x1xf32>
    %16 = arith.addf %12, %15 : vector<8x1xf32>
    %c0_11 = arith.constant 0 : index
    %c0_12 = arith.constant 0 : index
    %17 = vector.load %arg4[%c0_11, %c0_12] : memref<8x1xf32, #tpu.memory_space<vmem>>, vector<8x1xf32>
    tpu.vector_store %arg4[%c0_11, %c0_12], %16 {strides = array<i32>} : memref<8x1xf32, #tpu.memory_space<vmem>>, vector<8x1xf32>,
    return
  }
  func.func @transform_0(%arg0: i32, %arg1: i32) -> (i32, i32) {
    %c0_i32 = arith.constant 0 : i32
    return %arg0, %arg1 : i32, i32
  }
  func.func @transform_1(%arg0: i32, %arg1: i32) -> (i32, i32) {
    %c0_i32 = arith.constant 0 : i32
    %c0_i32_0 = arith.constant 0 : i32
    return %arg0, %c0_i32 : i32, i32
  }
  func.func @transform_2(%arg0: i32, %arg1: i32) -> (i32, i32) {
    %c0_i32 = arith.constant 0 : i32
    %c0_i32_0 = arith.constant 0 : i32
    return %arg0, %c0_i32 : i32, i32
  }
  func.func @transform_3(%arg0: i32, %arg1: i32) -> (i32, i32) {
    %c0_i32 = arith.constant 0 : i32
    %c0_i32_0 = arith.constant 0 : i32
    return %arg0, %c0_i32 : i32, i32
  }
}

</mosaic_0001>

<bundles_post_ra>
// kernel: tpu_custom_call.1
= control target key start
LH: loop header
LB: loop body
LE: loop exit
PB: predicated region body
PF: predicated region fallthrough
CT: control target
= control target key end

     0   :  { %9 = vsyncpa [#allocation3], 0  ;;  %s101_s15 = smov [#allocation2]   ;;  %s156_s0 = inlined_call_operand.hbm [shape: f32[8,256], index: 0, kind: input, shape index: {}]   ;;  %s157_s1 = inlined_call_operand.vmem [shape: f32[8,1], index: 1, kind: output, shape index: {0}]   ;;  %s158_s2 = inlined_call_operand.vmem [shape: f32[8,1], index: 2, kind: output, shape index: {1}]   ;;  %s159_s3 = inlined_call_operand.vmem [shape: f32[8,1], index: 3, kind: output, shape index: {2}]  }
   0x1   :  { %s15_s14 = sshll.u32 %s156_s0, 4  ;;  %s17_s16 = sshll.u32 %s101_s15, 4  ;;  %s16_s14 = int_to_ptr.hbm [resolvable:$true] %s15_s14  ;;  %s18_s16 = int_to_ptr.vmem [resolvable:$true] %s17_s16 }
   0x2   :  { %20 = dma.hbm_to_vmem [thread:$0]  %s16_s14, 256, %s18_s16, [#allocation3]  }
   0x3   :  { %99 = dma.done.wait [#allocation3], 256  }
   0x4   :  { %100 = vsyncadd [#allocation3], 4294967040  ;;  %v102_v0 = vmov 0   ;;  %vm31_vm0 = vcmask 7168   ;;  %v25_v1 = vld [vmem:[#allocation2] sm:$0xff]  ;;  %v103_v3 = vmov 0.0  }
   0x5   :  { %74 = vset.pattern.permute.xlu0 %v102_v0  ;;  %32 = vst.msk [vmem:[%s159_s3] sm:$0xff] %vm31_vm0, %v25_v1  ;;  %v26_v4 = vld [vmem:[#allocation2 + $0x8] sm:$0xff] }
   0x6   :  { %33 = vst.msk [vmem:[%s157_s1] sm:$0xff] %vm31_vm0, %v103_v3 }
   0x7   :  { %34 = vst.msk [vmem:[%s158_s2] sm:$0xff] %vm31_vm0, %v103_v3 }
   0xc   :  { %v35_v2 = vld [vmem:[%s159_s3] sm:$0xff] }
   0xd   :  { %38 = vperm.xlu0 %74, %v35_v2   ;;  %v43_v12 = vld [vmem:[%s157_s1] sm:$0xff] }
   0xe   :  { %v50_v14 = vld [vmem:[%s158_s2] sm:$0xff] }
  0x7f   :  { %v39_v5 = vpop.permute.xlu0 %38 }
  0x80   :  { %v41_v6 = vsub.f32 %v25_v1, %v39_v5  ;;  %v42_v7 = vsub.f32 %v26_v4, %v39_v5 }
  0x82   :  { %v44_v8 = vadd.f32 %v42_v7, %v41_v6  ;;  %v51_v9 = vmul.f32 %v41_v6, %v41_v6  ;;  %v52_v10 = vmul.f32 %v42_v7, %v42_v7 }
  0x84   :  { %45 = vadd.xlane.f32.xlu0 %v44_v8  ;;  %v53_v11 = vadd.f32 %v52_v10, %v51_v9 }
  0x86   :  { %54 = vadd.xlane.f32.xlu1 %v53_v11 }
  0xf7   :  { %v46_v13 = vpop.xlane.xlu0 %45 }
  0xf8   :  { %v47_v15 = vadd.f32 %v46_v13, %v43_v12 }
  0xf9   :  { %v55_v16 = vpop.xlane.xlu1 %54 }
  0xfa   :  { %49 = vst.msk [vmem:[%s157_s1] sm:$0xff] %vm31_vm0, %v47_v15  ;;  %v56_v17 = vadd.f32 %v55_v16, %v50_v14 }
  0xfc   :  { %57 = vst.msk [vmem:[%s158_s2] sm:$0xff] %vm31_vm0, %v56_v17 }
  0xfd   :  { %70 = vsyncpa [#allocation3], 1 }

</bundles_post_ra>
